<compile_context>
chip_gen: v7x
topology: tpu7x:2x2x1
jax: 0.10.0
libtpu: 0.0.40
codegen_flags: <defaults>
</compile_context>

<pallas_src>
import jax
import jax.numpy as jnp
from jax.experimental import pallas as pl
from jax.experimental.pallas import tpu as pltpu

LANES = 128


def make_vanilla_rnn_kernel(T, H):
    """Build the kernel with static T (seq length) and H (hidden) baked in."""

    def vanilla_rnn_kernel(x_ref, params_ref, out_ref):
        # x_ref: (T, B, 1), params_ref: (72, 128), out_ref: (B, 128)
        # Static sub-views of the packed parameter slab (no runtime cost).
        whh_t = params_ref[0:H, 0:H]                     # (H, H)   = Whh^T
        wph_t = params_ref[H:2 * H, :]                   # (H, 128) = Wph^T zero-padded
        whx_row = params_ref[2 * H:2 * H + 1, 0:H]       # (1, H)   = Whx^T
        bh_row = params_ref[2 * H + 1:2 * H + 2, 0:H]    # (1, H)   = bh^T
        bp_row = params_ref[2 * H + 2:2 * H + 3, :]      # (1, 128) = bp^T zero-padded

        # Hoisted input projection + hidden bias for ALL timesteps in one
        # batched VPU op (independent of h => off the recurrent critical path):
        #   a[t, b, :] = x[t, b] * Whx^T + bh^T
        x_tb1 = x_ref[...]                               # (T, B, 1)
        a_all = x_tb1 * whx_row.reshape(1, 1, H) + bh_row.reshape(1, 1, H)  # (T, B, H)

        # Fully unrolled serial recurrence (T is static and small):
        #   h_t = tanh(a_t + h_{t-1} @ Whh^T);  h_0 = 0 => first matmul vanishes.
        h = jnp.tanh(a_all[0])
        for t in range(1, T):
            h = jnp.tanh(
                a_all[t] + jnp.dot(h, whh_t, preferred_element_type=jnp.float32)
            )

        # p^T = h @ Wph^T + bp^T, lane-dense (B, 128); padded lanes are exact
        # zeros (Wph^T / bp^T zero-padded), wrapper slices [:, :C].
        out_ref[...] = (
            jnp.dot(h, wph_t, preferred_element_type=jnp.float32) + bp_row
        )

    return vanilla_rnn_kernel


def vanilla_rnn_forward(x, whx, whh, wph, bh, bp):
    """x: (B, T) float32. Returns (B, C) float32 (== p.t() in the PyTorch module)."""
    B, T = x.shape
    H = whh.shape[0]
    C = wph.shape[0]
    assert H <= LANES and C <= LANES and whx.shape[1] == 1

    # --- one-time wrapper-side re-layout (glue, not compute) ------------------
    # x: (B, T) -> (T, B, 1) so the kernel indexes the leading (time) axis.
    x_tb1 = jnp.transpose(x, (1, 0)).reshape(T, B, 1).astype(jnp.float32)

    # Pack all parameters into a single zero-padded (rows_pad, 128) f32 slab
    # (rows multiple of 8, lanes = 128) -> one DMA instead of five.
    n_rows = 2 * H + 3
    rows_pad = ((n_rows + 7) // 8) * 8
    params = jnp.zeros((rows_pad, LANES), dtype=jnp.float32)
    params = params.at[0:H, 0:H].set(whh.T.astype(jnp.float32))          # Whh^T
    params = params.at[H:2 * H, 0:C].set(wph.T.astype(jnp.float32))      # Wph^T (padded)
    params = params.at[2 * H, 0:H].set(whx[:, 0].astype(jnp.float32))    # Whx^T
    params = params.at[2 * H + 1, 0:H].set(bh[:, 0].astype(jnp.float32))  # bh^T
    params = params.at[2 * H + 2, 0:C].set(bp[:, 0].astype(jnp.float32))  # bp^T (padded)

    vmem = pl.BlockSpec(memory_space=pltpu.MemorySpace.VMEM)
    out_padded = pl.pallas_call(
        make_vanilla_rnn_kernel(T, H),
        out_shape=jax.ShapeDtypeStruct((B, LANES), jnp.float32),
        in_specs=[vmem, vmem],
        out_specs=vmem,
    )(x_tb1, params)
    return out_padded[:, :C]


def reference_forward(x, whx, whh, wph, bh, bp):
    """Pure-JAX re-implementation of the PyTorch forward for validation."""
    B, T = x.shape
    H = whx.shape[0]
    h = jnp.zeros((H, B), dtype=jnp.float32)
    for t in range(T):
        x_t = x[:, t].reshape(1, -1)        # (1, B)
        h = jnp.tanh(whx @ x_t + whh @ h + bh)
    p = wph @ h + bp                        # (C, B)
    return p.T                              # (B, C)


if __name__ == "__main__":
    # Small, deterministic shapes consistent with the module.
    # NOTE: at B=2/T=8/H=32 the kernel is launch/DMA-overhead bound; in-kernel
    # micro-opts only show in wall clock once B scales (>=8 sublanes, >=128 MXU rows).
    batch_size = 2
    seq_length = 8
    input_dim = 1       # forward() implies input_dim == 1 (x[:, t].view(1, -1))
    num_hidden = 32
    num_classes = 10

    key = jax.random.PRNGKey(0)
    k_x, k_whx, k_whh, k_wph = jax.random.split(key, 4)

    sigma = 0.0001
    whx = sigma * jax.random.normal(k_whx, (num_hidden, input_dim), dtype=jnp.float32)
    whh = sigma * jax.random.normal(k_whh, (num_hidden, num_hidden), dtype=jnp.float32)
    wph = sigma * jax.random.normal(k_wph, (num_classes, num_hidden), dtype=jnp.float32)
    bh = jnp.zeros((num_hidden, 1), dtype=jnp.float32)
    bp = jnp.zeros((num_classes, 1), dtype=jnp.float32)

    x = jax.random.normal(k_x, (batch_size, seq_length), dtype=jnp.float32)

    out = vanilla_rnn_forward(x, whx, whh, wph, bh, bp)
    out = jax.block_until_ready(out)

    ref = reference_forward(x, whx, whh, wph, bh, bp)
    assert out.shape == (batch_size, num_classes)
    assert jnp.allclose(out, ref, atol=1e-6, rtol=1e-5), "mismatch vs JAX reference"

    print("KERNEL_OK")
</pallas_src>

<mosaic_0001>
module attributes {stable_mosaic.version = 11 : i64} {
  func.func @vanilla_rnn_kernel(%arg0: memref<8x2x1xf32, #tpu.memory_space<vmem>>, %arg1: memref<72x128xf32, #tpu.memory_space<vmem>>, %arg2: memref<2x128xf32, #tpu.memory_space<vmem>>) attributes {dimension_semantics = [], scalar_prefetch = 0 : i64, scratch_operands = 0 : i64, tpu.core_type = #tpu.core_type<tc>} {
    %c0 = arith.constant 0 : index
    %c0_0 = arith.constant 0 : index
    %0 = vector.load %arg1[%c0, %c0_0] : memref<72x128xf32, #tpu.memory_space<vmem>>, vector<32x32xf32>
    %c32 = arith.constant 32 : index
    %c0_1 = arith.constant 0 : index
    %1 = vector.load %arg1[%c32, %c0_1] : memref<72x128xf32, #tpu.memory_space<vmem>>, vector<32x128xf32>
    %c64 = arith.constant 64 : index
    %c0_2 = arith.constant 0 : index
    %2 = vector.load %arg1[%c64, %c0_2] : memref<72x128xf32, #tpu.memory_space<vmem>>, vector<1x32xf32>
    %c65 = arith.constant 65 : index
    %c0_3 = arith.constant 0 : index
    %3 = vector.load %arg1[%c65, %c0_3] : memref<72x128xf32, #tpu.memory_space<vmem>>, vector<1x32xf32>
    %c66 = arith.constant 66 : index
    %c0_4 = arith.constant 0 : index
    %4 = vector.load %arg1[%c66, %c0_4] : memref<72x128xf32, #tpu.memory_space<vmem>>, vector<1x128xf32>
    %c0_5 = arith.constant 0 : index
    %c0_6 = arith.constant 0 : index
    %c0_7 = arith.constant 0 : index
    %5 = vector.load %arg0[%c0_5, %c0_6, %c0_7] : memref<8x2x1xf32, #tpu.memory_space<vmem>>, vector<8x2x1xf32>
    %6 = vector.shape_cast %2 : vector<1x32xf32> to vector<1x1x32xf32>
    %7 = vector.broadcast %5 : vector<8x2x1xf32> to vector<8x2x32xf32>
    %8 = vector.broadcast %6 : vector<1x1x32xf32> to vector<8x2x32xf32>
    %9 = arith.mulf %7, %8 : vector<8x2x32xf32>
    %10 = vector.shape_cast %3 : vector<1x32xf32> to vector<1x1x32xf32>
    %11 = vector.broadcast %10 : vector<1x1x32xf32> to vector<8x2x32xf32>
    %12 = arith.addf %9, %11 : vector<8x2x32xf32>
    %13 = vector.extract_strided_slice %12 {offsets = [0, 0, 0], sizes = [1, 2, 32], strides = [1, 1, 1]} : vector<8x2x32xf32> to vector<1x2x32xf32>
    %14 = vector.shape_cast %13 : vector<1x2x32xf32> to vector<2x32xf32>
    %15 = math.tanh %14 : vector<2x32xf32>
    %16 = vector.extract_strided_slice %12 {offsets = [1, 0, 0], sizes = [1, 2, 32], strides = [1, 1, 1]} : vector<8x2x32xf32> to vector<1x2x32xf32>
    %17 = vector.shape_cast %16 : vector<1x2x32xf32> to vector<2x32xf32>
    %cst = arith.constant dense<0.000000e+00> : vector<2x32xf32>
    %18 = tpu.matmul %15, %0, %cst {dimension_numbers = #tpu.dot_dimension_numbers<[1], [0], [0], [1], [0, 0, 1, 1], [], []>} : vector<2x32xf32>, vector<32x32xf32>, vector<2x32xf32> -> vector<2x32xf32>
    %19 = arith.addf %17, %18 : vector<2x32xf32>
    %20 = math.tanh %19 : vector<2x32xf32>
    %21 = vector.extract_strided_slice %12 {offsets = [2, 0, 0], sizes = [1, 2, 32], strides = [1, 1, 1]} : vector<8x2x32xf32> to vector<1x2x32xf32>
    %22 = vector.shape_cast %21 : vector<1x2x32xf32> to vector<2x32xf32>
    %cst_8 = arith.constant dense<0.000000e+00> : vector<2x32xf32>
    %23 = tpu.matmul %20, %0, %cst_8 {dimension_numbers = #tpu.dot_dimension_numbers<[1], [0], [0], [1], [0, 0, 1, 1], [], []>} : vector<2x32xf32>, vector<32x32xf32>, vector<2x32xf32> -> vector<2x32xf32>
    %24 = arith.addf %22, %23 : vector<2x32xf32>
    %25 = math.tanh %24 : vector<2x32xf32>
    %26 = vector.extract_strided_slice %12 {offsets = [3, 0, 0], sizes = [1, 2, 32], strides = [1, 1, 1]} : vector<8x2x32xf32> to vector<1x2x32xf32>
    %27 = vector.shape_cast %26 : vector<1x2x32xf32> to vector<2x32xf32>
    %cst_9 = arith.constant dense<0.000000e+00> : vector<2x32xf32>
    %28 = tpu.matmul %25, %0, %cst_9 {dimension_numbers = #tpu.dot_dimension_numbers<[1], [0], [0], [1], [0, 0, 1, 1], [], []>} : vector<2x32xf32>, vector<32x32xf32>, vector<2x32xf32> -> vector<2x32xf32>
    %29 = arith.addf %27, %28 : vector<2x32xf32>
    %30 = math.tanh %29 : vector<2x32xf32>
    %31 = vector.extract_strided_slice %12 {offsets = [4, 0, 0], sizes = [1, 2, 32], strides = [1, 1, 1]} : vector<8x2x32xf32> to vector<1x2x32xf32>
    %32 = vector.shape_cast %31 : vector<1x2x32xf32> to vector<2x32xf32>
    %cst_10 = arith.constant dense<0.000000e+00> : vector<2x32xf32>
    %33 = tpu.matmul %30, %0, %cst_10 {dimension_numbers = #tpu.dot_dimension_numbers<[1], [0], [0], [1], [0, 0, 1, 1], [], []>} : vector<2x32xf32>, vector<32x32xf32>, vector<2x32xf32> -> vector<2x32xf32>
    %34 = arith.addf %32, %33 : vector<2x32xf32>
    %35 = math.tanh %34 : vector<2x32xf32>
    %36 = vector.extract_strided_slice %12 {offsets = [5, 0, 0], sizes = [1, 2, 32], strides = [1, 1, 1]} : vector<8x2x32xf32> to vector<1x2x32xf32>
    %37 = vector.shape_cast %36 : vector<1x2x32xf32> to vector<2x32xf32>
    %cst_11 = arith.constant dense<0.000000e+00> : vector<2x32xf32>
    %38 = tpu.matmul %35, %0, %cst_11 {dimension_numbers = #tpu.dot_dimension_numbers<[1], [0], [0], [1], [0, 0, 1, 1], [], []>} : vector<2x32xf32>, vector<32x32xf32>, vector<2x32xf32> -> vector<2x32xf32>
    %39 = arith.addf %37, %38 : vector<2x32xf32>
    %40 = math.tanh %39 : vector<2x32xf32>
    %41 = vector.extract_strided_slice %12 {offsets = [6, 0, 0], sizes = [1, 2, 32], strides = [1, 1, 1]} : vector<8x2x32xf32> to vector<1x2x32xf32>
    %42 = vector.shape_cast %41 : vector<1x2x32xf32> to vector<2x32xf32>
    %cst_12 = arith.constant dense<0.000000e+00> : vector<2x32xf32>
    %43 = tpu.matmul %40, %0, %cst_12 {dimension_numbers = #tpu.dot_dimension_numbers<[1], [0], [0], [1], [0, 0, 1, 1], [], []>} : vector<2x32xf32>, vector<32x32xf32>, vector<2x32xf32> -> vector<2x32xf32>
    %44 = arith.addf %42, %43 : vector<2x32xf32>
    %45 = math.tanh %44 : vector<2x32xf32>
    %46 = vector.extract_strided_slice %12 {offsets = [7, 0, 0], sizes = [1, 2, 32], strides = [1, 1, 1]} : vector<8x2x32xf32> to vector<1x2x32xf32>
    %47 = vector.shape_cast %46 : vector<1x2x32xf32> to vector<2x32xf32>
    %cst_13 = arith.constant dense<0.000000e+00> : vector<2x32xf32>
    %48 = tpu.matmul %45, %0, %cst_13 {dimension_numbers = #tpu.dot_dimension_numbers<[1], [0], [0], [1], [0, 0, 1, 1], [], []>} : vector<2x32xf32>, vector<32x32xf32>, vector<2x32xf32> -> vector<2x32xf32>
    %49 = arith.addf %47, %48 : vector<2x32xf32>
    %50 = math.tanh %49 : vector<2x32xf32>
    %cst_14 = arith.constant dense<0.000000e+00> : vector<2x128xf32>
    %51 = tpu.matmul %50, %1, %cst_14 {dimension_numbers = #tpu.dot_dimension_numbers<[1], [0], [0], [1], [0, 0, 1, 1], [], []>} : vector<2x32xf32>, vector<32x128xf32>, vector<2x128xf32> -> vector<2x128xf32>
    %52 = vector.broadcast %4 : vector<1x128xf32> to vector<2x128xf32>
    %53 = arith.addf %51, %52 : vector<2x128xf32>
    %c0_15 = arith.constant 0 : index
    %c0_16 = arith.constant 0 : index
    %54 = vector.load %arg2[%c0_15, %c0_16] : memref<2x128xf32, #tpu.memory_space<vmem>>, vector<2x128xf32>
    tpu.vector_store %arg2[%c0_15, %c0_16], %53 {strides = array<i32>} : memref<2x128xf32, #tpu.memory_space<vmem>>, vector<2x128xf32>,
    return
  }
}

</mosaic_0001>

<bundles_post_ra>
// kernel: tpu_custom_call.1
= control target key start
LH: loop header
LB: loop body
LE: loop exit
PB: predicated region body
PF: predicated region fallthrough
CT: control target
= control target key end

     0   :  { %7 = vsyncpa [#allocation3], 0  ;;  %s1139_s0 = inlined_call_operand.vmem [shape: f32[8,2,1], index: 0, kind: input, shape index: {}]   ;;  %s1140_s1 = inlined_call_operand.hbm [shape: f32[72,128], index: 1, kind: input, shape index: {}]   ;;  %s1141_s2 = inlined_call_operand.hbm [shape: f32[2,128], index: 2, kind: output, shape index: {}]  }
   0x1   :  { %8 = vsyncpa [#allocation4], 0  ;;  %s990_s9 = smov [#allocation2]   ;;  %s942_s13 = scalar_lea.hbm %s1140_s1, 1152 }
   0x2   :  { %s16_s10 = sshll.u32 %s990_s9, 4  ;;  %p943_p0 = scmp.ne.s32.totalorder %s1140_s1, %s942_s13  ;;  %s17_s10 = int_to_ptr.vmem [resolvable:$true] %s16_s10 }
   0x3   :  { %p946_p1 = scmp.lt.u32.totalorder %s942_s13, %s1140_s1 }
   0x5   :  { %p948_p2 = pnand %p946_p1, %p943_p0 }
   0x7   :  { %951 = shalt.err (!%p948_p2)
}
   0x8   :  { %s952_s18 = scalar_lea.vmem %s17_s10, 1152  ;;  %p957_p4 = scmp.lt.s32.totalorder %s17_s10, %s17_s10 }
   0x9   :  { %p953_p3 = scmp.ne.s32.totalorder %s17_s10, %s952_s18  ;;  %p958_p5 = scmp.lt.s32.totalorder %s952_s18, %s952_s18 }
   0xb   :  { %p959_p6 = por %p958_p5, %p957_p4 }
   0xd   :  { %p960_p7 = pnand %p959_p6, %p953_p3 }
   0xf   :  { %963 = shalt.err (!%p960_p7)
}
  0x10   :  { %s991_s19 = smov 128   ;;  %s992_s20 = smov 8  }
  0x11   :  { %22 = dma.hbm_to_vmem [thread:$0]  %s1140_s1, 1152, %s17_s10, [#allocation3], %s991_s19, %s991_s19, %s992_s20  }
  0x12   :  { %986 = dma.done.wait [#allocation3], 1152  }
  0x13   :  { %987 = vsyncadd [#allocation3], 4294966144  ;;  %v993_v0 = vmov 0   ;;  %v37_v1 = vld [vmem:[%s1139_s0] sm:$0x3]  ;;  %v994_v4 = vmov 0.0|0.0  }
  0x14   :  { %924 = vset.pattern.permute.xlu0 %v993_v0  ;;  %925 = vset.pattern.permute.xlu1 %v993_v0  ;;  %v38_v2 = vld [vmem:[%s1139_s0 + $0x2] sm:$0x3]  ;;  %v41_v3 = vld [vmem:[%s1139_s0 + $0x8] sm:$0x3]  ;;  %v43_v8 = vld [vmem:[%s1139_s0 + $0xc] sm:$0x3] }
  0x15   :  { %47 = vperm.xlu0 %924, %v37_v1   ;;  %868 = vmatprep.subr.bf16.mxu0 %v994_v4  ;;  %v26_v5 = vld [vmem:[#allocation2] sm:$0xff]  ;;  %v27_v6 = vld [vmem:[#allocation2 + $0x8] sm:$0xff]  ;;  %v28_v9 = vld [vmem:[#allocation2 + $0x10] sm:$0xff]  ;;  %vm995_vm0 = vmmov 0   ;;  %v996_v12 = vmov 0.0   ;;  %vm110_vm1 = vcmask 261120  }
  0x16   :  { %874 = vmatprep.subr.bf16.mxu1 %v994_v4  ;;  %v1036_v7 = vpack.c.bf16 %v27_v6, %v26_v5  ;;  %v29_v10 = vld [vmem:[#allocation2 + $0x18] sm:$0xff]  ;;  %788 = vmatprep.mubr.msk.f32.mxu0 %vm995_vm0, %v996_v12  ;;  %v1055_v13 = vld [vmem:[#allocation2 + $0x40] ss:$0 sm:$0xff]  ;;  %v1057_v15 = vld [vmem:[#allocation2 + $0x41] ss:$0 sm:$0xff] }
  0x17   :  { %v1044_v11 = vpack.c.bf16 %v29_v10, %v28_v9  ;;  %799 = vmatprep.mubr.msk.f32.mxu1 %vm995_vm0, %v996_v12  ;;  %v39_v19 = vld [vmem:[%s1139_s0 + $0x4] sm:$0x3]  ;;  %v40_v20 = vld [vmem:[%s1139_s0 + $0x6] sm:$0x3]  ;;  %v42_v21 = vld [vmem:[%s1139_s0 + $0xa] sm:$0x3] }
  0x18   :  { %870 = vmatpush3.bf16.msra.mxu0 %v1036_v7  ;;  %876 = vmatpush3.bf16.msra.mxu1 %v1036_v7  ;;  %v44_v22 = vld [vmem:[%s1139_s0 + $0xe] sm:$0x3]  ;;  %v30_v1 = vld [vmem:[#allocation2 + $0x20] sm:$0xff]  ;;  %v33_v6 = vld [vmem:[#allocation2 + $0x38] sm:$0xff]  ;;  %s997_s0 = smov [#allocation5]  }
  0x19   :  { %52 = vperm.xlu0 %924, %v38_v2   ;;  %871 = vmatprep.subr.bf16.mxu0 %v994_v4  ;;  %v31_v2 = vld [vmem:[#allocation2 + $0x28] sm:$0xff]  ;;  %s720_s10 = sshll.u32 %s997_s0, 4  ;;  %s721_s10 = int_to_ptr.vmem [resolvable:$true] %s720_s10 }
  0x1a   :  { %877 = vmatprep.subr.bf16.mxu1 %v994_v4  ;;  %57 = vperm.xlu1 %925, %v39_v19   ;;  %v911_v5 = vpack.c.bf16 %v31_v2, %v30_v1  ;;  %s964_s11 = scalar_lea.vmem %s721_s10, 32  ;;  %p969_p9 = scmp.lt.s32.totalorder %s721_s10, %s721_s10 }
  0x1b   :  { %p965_p8 = scmp.ne.s32.totalorder %s721_s10, %s964_s11  ;;  %p970_p10 = scmp.lt.s32.totalorder %s964_s11, %s964_s11 }
  0x1c   :  { %873 = vmatpush3.bf16.msra.mxu0 %v1044_v11  ;;  %879 = vmatpush3.bf16.msra.mxu1 %v1044_v11 }
  0x1d   :  { %67 = vperm.xlu0 %924, %v41_v3   ;;  %880 = vmatprep.subr.bf16.mxu0 %v994_v4  ;;  %v32_v3 = vld [vmem:[#allocation2 + $0x30] sm:$0xff]  ;;  %p971_p11 = por %p970_p10, %p969_p9 }
  0x1e   :  { %886 = vmatprep.subr.bf16.mxu1 %v994_v4  ;;  %62 = vperm.xlu1 %925, %v40_v20  }
  0x1f   :  { %p972_p12 = pnand %p971_p11, %p965_p8 }
  0x21   :  { %77 = vperm.xlu0 %924, %v43_v8  }
  0x22   :  { %72 = vperm.xlu1 %925, %v42_v21  }
  0x26   :  { %82 = vperm.xlu1 %925, %v44_v22  }
  0x94   :  { %v48_v14 = vpop.permute.xlu0 %47 }
  0x95   :  { %v89_v16 = vmul.f32 %v1055_v13, %v48_v14 }
  0x97   :  { %v101_v17 = vadd.f32 %v1057_v15, %v89_v16 }
  0x98   :  { %v53_v23 = vpop.permute.xlu0 %52 }
  0x99   :  { %926 = vtanh.f32 %v101_v17  ;;  %v90_v24 = vmul.f32 %v1055_v13, %v53_v23  ;;  %v58_v30 = vpop.permute.xlu1 %57  ;;  %v738_v17 = vld [vmem:[#allocation2 + $0x42] ss:$0 sm:$0xff] }
  0x9a   :  { %v91_v31 = vmul.f32 %v1055_v13, %v58_v30 }
  0x9b   :  { %v102_v25 = vadd.f32 %v1057_v15, %v90_v24 }
  0x9c   :  { %v103_v32 = vadd.f32 %v1057_v15, %v91_v31  ;;  %v68_v44 = vpop.permute.xlu0 %67 }
  0x9d   :  { %v63_v37 = vpop.permute.xlu1 %62  ;;  %v93_v45 = vmul.f32 %v1055_v13, %v68_v44 }
  0x9e   :  { %v92_v38 = vmul.f32 %v1055_v13, %v63_v37 }
  0x9f   :  { %v105_v46 = vadd.f32 %v1057_v15, %v93_v45 }
  0xa0   :  { %v104_v39 = vadd.f32 %v1057_v15, %v92_v38  ;;  %v78_v58 = vpop.permute.xlu0 %77 }
  0xa1   :  { %v73_v51 = vpop.permute.xlu1 %72  ;;  %v95_v59 = vmul.f32 %v1055_v13, %v78_v58 }
  0xa2   :  { %v94_v52 = vmul.f32 %v1055_v13, %v73_v51 }
  0xa3   :  { %v927_v18 = vpop.eup %926  ;;  %v107_v60 = vadd.f32 %v1057_v15, %v95_v59 }
  0xa4   :  { %789 = vmatmul.mubr.msk.f32.vlgmr.msra.gmra.mrb[0].mxu0 %vm110_vm1, %v927_v18  ;;  %v106_v53 = vadd.f32 %v1057_v15, %v94_v52 }
  0xa5   :  { %882 = vmatpush3.bf16.msra.mxu0 %v1036_v7  ;;  %810 = vmatprep.mubr.msk.f32.mxu0 %vm995_vm0, %v996_v12  ;;  %v83_v8 = vpop.permute.xlu1 %82 }
  0xa6   :  { %883 = vmatprep.subr.bf16.mxu0 %v994_v4  ;;  %v96_v9 = vmul.f32 %v1055_v13, %v83_v8 }
  0xa8   :  { %v108_v10 = vadd.f32 %v1057_v15, %v96_v9 }
  0xa9   :  { %885 = vmatpush3.bf16.msra.mxu0 %v1044_v11 }
  0xaa   :  { %892 = vmatprep.subr.bf16.mxu0 %v994_v4 }
 0x177   :  { %v180_v26 = vpop.f32.mrb[0].mxu0 }
 0x178   :  { %v184_v27 = vadd.f32 %v180_v26, %v102_v25  ;;  %v790_v28 = vpop.f32.mrb[1].mxu0 }
 0x17a   :  { %928 = vtanh.f32 %v184_v27 }
 0x184   :  { %v929_v29 = vpop.eup %928 }
 0x185   :  { %800 = vmatmul.mubr.msk.f32.vlgmr.msra.gmra.mrb[0].mxu1 %vm110_vm1, %v929_v29 }
 0x186   :  { %888 = vmatpush3.bf16.msra.mxu1 %v1036_v7  ;;  %821 = vmatprep.mubr.msk.f32.mxu1 %vm995_vm0, %v996_v12 }
 0x187   :  { %889 = vmatprep.subr.bf16.mxu1 %v994_v4 }
 0x18a   :  { %891 = vmatpush3.bf16.msra.mxu1 %v1044_v11 }
 0x18b   :  { %898 = vmatprep.subr.bf16.mxu1 %v994_v4 }
 0x258   :  { %v255_v33 = vpop.f32.mrb[0].mxu1 }
 0x259   :  { %v259_v34 = vadd.f32 %v255_v33, %v103_v32  ;;  %v801_v35 = vpop.f32.mrb[1].mxu1 }
 0x25b   :  { %930 = vtanh.f32 %v259_v34 }
 0x265   :  { %v931_v36 = vpop.eup %930 }
 0x266   :  { %811 = vmatmul.mubr.msk.f32.vlgmr.msra.gmra.mrb[2].mxu0 %vm110_vm1, %v931_v36 }
 0x267   :  { %894 = vmatpush3.bf16.msra.mxu0 %v1036_v7  ;;  %832 = vmatprep.mubr.msk.f32.mxu0 %vm995_vm0, %v996_v12 }
 0x268   :  { %895 = vmatprep.subr.bf16.mxu0 %v994_v4 }
 0x26b   :  { %897 = vmatpush3.bf16.msra.mxu0 %v1044_v11 }
 0x26c   :  { %904 = vmatprep.subr.bf16.mxu0 %v994_v4 }
 0x339   :  { %v330_v40 = vpop.f32.mrb[2].mxu0 }
 0x33a   :  { %v334_v41 = vadd.f32 %v330_v40, %v104_v39  ;;  %v812_v42 = vpop.f32.mrb[3].mxu0 }
 0x33c   :  { %932 = vtanh.f32 %v334_v41 }
 0x346   :  { %v933_v43 = vpop.eup %932 }
 0x347   :  { %822 = vmatmul.mubr.msk.f32.vlgmr.msra.gmra.mrb[2].mxu1 %vm110_vm1, %v933_v43 }
 0x348   :  { %900 = vmatpush3.bf16.msra.mxu1 %v1036_v7  ;;  %843 = vmatprep.mubr.msk.f32.mxu1 %vm995_vm0, %v996_v12 }
 0x349   :  { %901 = vmatprep.subr.bf16.mxu1 %v994_v4 }
 0x34c   :  { %903 = vmatpush3.bf16.msra.mxu1 %v1044_v11 }
 0x34d   :  { %910 = vmatprep.subr.bf16.mxu1 %v994_v4 }
 0x41a   :  { %v405_v47 = vpop.f32.mrb[2].mxu1 }
 0x41b   :  { %v409_v48 = vadd.f32 %v405_v47, %v105_v46  ;;  %v823_v49 = vpop.f32.mrb[3].mxu1 }
 0x41d   :  { %934 = vtanh.f32 %v409_v48 }
 0x427   :  { %v935_v50 = vpop.eup %934 }
 0x428   :  { %833 = vmatmul.mubr.msk.f32.vlgmr.msra.gmra.mrb[4].mxu0 %vm110_vm1, %v935_v50 }
 0x429   :  { %906 = vmatpush3.bf16.msra.mxu0 %v1036_v7  ;;  %854 = vmatprep.mubr.msk.f32.mxu0 %vm995_vm0, %v996_v12  ;;  %v914_v7 = vpack.c.bf16 %v33_v6, %v32_v3 }
 0x42a   :  { %907 = vmatprep.subr.bf16.mxu0 %v994_v4 }
 0x42d   :  { %909 = vmatpush3.bf16.msra.mxu0 %v1044_v11 }
 0x4fb   :  { %v480_v54 = vpop.f32.mrb[4].mxu0 }
 0x4fc   :  { %v484_v55 = vadd.f32 %v480_v54, %v106_v53  ;;  %v834_v56 = vpop.f32.mrb[5].mxu0 }
 0x4fe   :  { %936 = vtanh.f32 %v484_v55 }
 0x508   :  { %v937_v57 = vpop.eup %936 }
 0x509   :  { %844 = vmatmul.mubr.msk.f32.vlgmr.msra.gmra.mrb[4].mxu1 %vm110_vm1, %v937_v57 }
 0x50a   :  { %865 = vmatprep.mubr.msk.f32.mxu1 %vm995_vm0, %v996_v12  ;;  %912 = vmatpush3.bf16.msra.mxu1 %v911_v5 }
 0x50b   :  { %913 = vmatprep.subr.bf16.mxu1 %v994_v4 }
 0x50e   :  { %915 = vmatpush3.bf16.msra.mxu1 %v914_v7 }
 0x5dc   :  { %v555_v61 = vpop.f32.mrb[4].mxu1 }
 0x5dd   :  { %v559_v62 = vadd.f32 %v555_v61, %v107_v60  ;;  %v845_v63 = vpop.f32.mrb[5].mxu1 }
 0x5df   :  { %938 = vtanh.f32 %v559_v62 }
 0x5e9   :  { %v939_v0 = vpop.eup %938 }
 0x5ea   :  { %855 = vmatmul.mubr.msk.f32.vlgmr.msra.gmra.mrb[6].mxu0 %vm110_vm1, %v939_v0 }
 0x6bd   :  { %v630_v11 = vpop.f32.mrb[6].mxu0 }
 0x6be   :  { %v634_v12 = vadd.f32 %v630_v11, %v108_v10  ;;  %v856_v14 = vpop.f32.mrb[7].mxu0 }
 0x6c0   :  { %940 = vtanh.f32 %v634_v12 }
 0x6ca   :  { %v941_v16 = vpop.eup %940 }
 0x6cb   :  { %866 = vmatmul.mubr.msk.f32.vlgmr.msra.gmra.mrb[6].mxu1 %vm110_vm1, %v941_v16 }
 0x79e   :  { %v709_v18 = vpop.f32.mrb[6].mxu1 }
 0x79f   :  { %v710_v19 = vadd.f32 %v738_v17, %v709_v18  ;;  %v867_v20 = vpop.f32.mrb[7].mxu1 }
 0x7a1   :  { %713 = vst [vmem:[#allocation5] sm:$0x3] %v710_v19 }
 0x7a2   :  { %975 = shalt.err (!%p972_p12)
}
 0x7a3   :  { %s976_s14 = scalar_lea.hbm %s1141_s2, 32 }
 0x7a4   :  { %p977_p13 = scmp.ne.s32.totalorder %s1141_s2, %s976_s14  ;;  %p980_p0 = scmp.lt.u32.totalorder %s976_s14, %s1141_s2 }
 0x7a6   :  { %p982_p1 = pnand %p980_p0, %p977_p13 }
 0x7a8   :  { %985 = shalt.err (!%p982_p1)
}
 0x7a9   :  { %723 = dma.vmem_to_hbm [thread:$0]  %s721_s10, 32, %s1141_s2, [#allocation4]  }
 0x7aa   :  { %988 = dma.done.wait [#allocation4], 32  }
 0x7ab   :  { %989 = vsyncadd [#allocation4], 4294967264 }
 0x7ac   :  { %727 = vsyncpa [#allocation3], 1 }
 0x7ad   :  { %728 = vsyncpa [#allocation4], 1 }

</bundles_post_ra>
